<compile_context>
chip_gen: v7x
topology: tpu7x:2x2x1
jax: 0.10.0
libtpu: 0.0.40
codegen_flags: <defaults>
</compile_context>

<pallas_src>
import functools

import jax
import jax.numpy as jnp
from jax import lax
from jax.experimental import pallas as pl
from jax.experimental.pallas import tpu as pltpu


def _round_up(n, m):
    return ((n + m - 1) // m) * m


def _largest_divisor_leq(n, cap):
    cap = max(1, min(n, cap))
    for d in range(cap, 0, -1):
        if n % d == 0:
            return d
    return 1


def _pad_to(a, shape):
    return jnp.pad(a, [(0, s - d) for d, s in zip(a.shape, shape)])


def _tpu_config():
    """Returns (num TensorCores a single pallas_call spans, per-TC VMEM bytes)."""
    kind = ""
    try:
        kind = jax.devices()[0].device_kind.lower()
    except Exception:
        pass
    if "v7" in kind:
        n_tc, vmem_cap = 2, 64 << 20          # two TCs share the grid; 64 MiB/TC
    elif ("v4" in kind) or ("v5p" in kind):
        n_tc, vmem_cap = 2, 128 << 20         # megacore
    else:
        n_tc, vmem_cap = 1, 128 << 20         # v5e / v6e: one TC per chip
    try:
        info = pltpu.get_tpu_info()
        cap = int(getattr(info, "vmem_capacity_bytes", vmem_cap))
        if cap > 0:
            vmem_cap = min(vmem_cap, cap)
    except Exception:
        pass
    return n_tc, vmem_cap


# ---------------------------------------------------------------------------
# Recurrent kernel (input projection fused):
#   h = act(x_t @ W_ih^T + (b_ih + b_hh) + h @ W_hh^T)
# grid = (batch_blocks [parallel], time_blocks [arbitrary/serial]).
# The final hidden state is the kernel output (resident f32 block).
# ---------------------------------------------------------------------------
def _recurrent_kernel(x_ref, wih_ref, bias_ref, whh_ref, hout_ref, *,
                      tc, activation, sigma, compute_dtype, unroll):
    t = pl.program_id(1)

    @pl.when(t == 0)
    def _():
        hout_ref[...] = jnp.zeros_like(hout_ref)

    def step(i, h):
        # Fused input projection: depends only on x, so the unrolled scheduler
        # issues it off the serial h-dependency chain.
        pre = (jnp.dot(x_ref[i], wih_ref[...], preferred_element_type=jnp.float32)
               + bias_ref[...]
               + jnp.dot(h.astype(compute_dtype), whh_ref[...],
                         preferred_element_type=jnp.float32))
        if activation == "tanh":
            return jnp.tanh(pre) * sigma
        elif activation == "custom":
            # relu -> clamp(0, sigma) -> sqrt(y/sigma)*sigma == sqrt(clip(pre,0,s)*s)
            return jnp.sqrt(jnp.clip(pre, 0.0, sigma) * sigma)
        else:                                   # 'relu' (default)
            return jnp.maximum(pre, 0.0)

    hout_ref[...] = lax.fori_loop(0, tc, step, hout_ref[...], unroll=unroll)


# ---------------------------------------------------------------------------
# Epilogue kernel: y = h @ W_lin^T + b_lin (+ masked softmax).
# ---------------------------------------------------------------------------
def _linear_kernel(h_ref, w_ref, b_ref, o_ref, *, classification, valid_out,
                   compute_dtype):
    y = (jnp.dot(h_ref[...].astype(compute_dtype), w_ref[...],
                 preferred_element_type=jnp.float32) + b_ref[...])
    if classification:
        col = lax.broadcasted_iota(jnp.int32, y.shape, 1)
        y = jnp.where(col < valid_out, y, -jnp.inf)        # mask padded O cols
        m = jnp.max(y, axis=-1, keepdims=True)
        e = jnp.exp(y - m)
        y = e * pl.reciprocal(jnp.sum(e, axis=-1, keepdims=True), approx=False)
    o_ref[...] = y.astype(o_ref.dtype)


def rnn_forward(x, params, *, activation_function="relu", sigma_magnitude=255.0,
                classification=False, compute_dtype=jnp.bfloat16,
                time_block=None, batch_block=None, unroll=None):
    """Pallas equivalent of RNN.forward. x: (T, B, input_size) float32."""
    T, B, I = x.shape
    H = params["w_hh"].shape[0]
    O = params["w_lin"].shape[0]
    sigma = float(sigma_magnitude)

    # ---- pad to hardware tiles: sublane (8) for batch, lane (128) for I/H/O.
    B_p = _round_up(B, 8)
    I_p = _round_up(I, 128)
    H_p = _round_up(H, 128)
    O_p = _round_up(O, 128)

    n_tc, vmem_cap = _tpu_config()

    # ---- host-side constant folding.
    wih_t = params["w_ih"].T
    if activation_function == "tanh":
        wih_t = wih_t / sigma                                 # fold x/sigma into W_ih
    bias = (params["b_ih"] + params["b_hh"]).reshape(1, H)    # pre-summed bias

    wih_t = _pad_to(wih_t, (I_p, H_p)).astype(compute_dtype)
    whh_t = _pad_to(params["w_hh"].T, (H_p, H_p)).astype(compute_dtype)
    wlin_t = _pad_to(params["w_lin"].T, (H_p, O_p)).astype(compute_dtype)
    bias = _pad_to(bias, (1, H_p)).astype(jnp.float32)
    blin = _pad_to(params["b_lin"].reshape(1, O), (1, O_p)).astype(jnp.float32)

    x_p = _pad_to(x, (T, B_p, I_p)).astype(compute_dtype)

    # ---- batch sharding: split only across TensorCores that actually exist.
    if batch_block is None:
        n_b = n_tc if (n_tc > 1 and B_p % (8 * n_tc) == 0) else 1
        batch_block = B_p // n_b
    assert B_p % batch_block == 0 and batch_block % 8 == 0
    n_b = B_p // batch_block
    bb = batch_block

    # ---- size the time block from the per-TC VMEM budget.
    csize = jnp.dtype(compute_dtype).itemsize
    budget = min(int(0.75 * vmem_cap), vmem_cap - (8 << 20))
    fixed = (2 * (I_p * H_p + H_p * H_p) * csize   # W_ih^T, W_hh^T (dbl-buffered)
             + 2 * H_p * 4                         # bias
             + 2 * bb * H_p * 4)                   # resident f32 h / output block
    per_tc = 2 * bb * I_p * csize                  # x block (double-buffered)
    tc_cap = max(1, (budget - fixed) // per_tc)
    if time_block is not None:
        tc_cap = min(tc_cap, time_block)
    tc = _largest_divisor_leq(T, int(tc_cap))
    n_t = T // tc
    if unroll is None:
        unroll = int(min(tc, 8))                   # bound live ranges / spill

    vmem_limit = int(min(vmem_cap - (2 << 20),
                         max(32 << 20, fixed + tc * per_tc + (8 << 20))))

    kernel = functools.partial(
        _recurrent_kernel, tc=tc, activation=activation_function, sigma=sigma,
        compute_dtype=compute_dtype, unroll=unroll)

    h_final = pl.pallas_call(
        kernel,
        out_shape=jax.ShapeDtypeStruct((B_p, H_p), jnp.float32),
        grid_spec=pltpu.PrefetchScalarGridSpec(
            num_scalar_prefetch=0,
            grid=(n_b, n_t),
            in_specs=[
                pl.BlockSpec((tc, bb, I_p), lambda b, t: (t, b, 0)),  # x
                pl.BlockSpec((I_p, H_p), lambda b, t: (0, 0)),        # W_ih^T
                pl.BlockSpec((1, H_p), lambda b, t: (0, 0)),          # b_ih+b_hh
                pl.BlockSpec((H_p, H_p), lambda b, t: (0, 0)),        # W_hh^T
            ],
            out_specs=pl.BlockSpec((bb, H_p), lambda b, t: (b, 0)),
        ),
        compiler_params=pltpu.CompilerParams(
            dimension_semantics=("parallel", "arbitrary"),
            vmem_limit_bytes=vmem_limit),
    )(x_p, wih_t, bias, whh_t)

    # ---- epilogue: Linear (+ masked softmax) in its own tiny kernel so
    # W_lin^T never occupies VMEM during the recurrence.
    lin_need = 2 * (B_p * H_p * 4 + H_p * O_p * csize + O_p * 4 + B_p * O_p * 4)
    lin_limit = int(min(vmem_cap - (2 << 20), max(32 << 20, lin_need + (4 << 20))))
    lin_kernel = functools.partial(
        _linear_kernel, classification=classification, valid_out=O,
        compute_dtype=compute_dtype)
    out_p = pl.pallas_call(
        lin_kernel,
        out_shape=jax.ShapeDtypeStruct((B_p, O_p), jnp.float32),
        grid_spec=pltpu.PrefetchScalarGridSpec(
            num_scalar_prefetch=0,
            grid=(1,),
            in_specs=[
                pl.BlockSpec((B_p, H_p), lambda i: (0, 0)),
                pl.BlockSpec((H_p, O_p), lambda i: (0, 0)),
                pl.BlockSpec((1, O_p), lambda i: (0, 0)),
            ],
            out_specs=pl.BlockSpec((B_p, O_p), lambda i: (0, 0)),
        ),
        compiler_params=pltpu.CompilerParams(
            dimension_semantics=("arbitrary",),
            vmem_limit_bytes=lin_limit),
    )(h_final, wlin_t, blin)

    return out_p[:B, :O]


def _reference(x, params, *, activation_function="relu", sigma_magnitude=255.0,
               classification=False):
    """Pure-JAX f32 reference mirroring the PyTorch forward."""
    T, B, I = x.shape
    H = params["w_hh"].shape[0]
    y = jnp.zeros((B, H), jnp.float32)
    xs = x / sigma_magnitude if activation_function == "tanh" else x
    for i in range(T):
        pre = (xs[i] @ params["w_ih"].T + params["b_ih"]
               + y @ params["w_hh"].T + params["b_hh"])
        if activation_function == "tanh":
            y = jnp.tanh(pre) * sigma_magnitude
        elif activation_function == "custom":
            y = jnp.clip(jnp.maximum(pre, 0.0), 0.0, sigma_magnitude)
            y = jnp.sqrt(y / sigma_magnitude) * sigma_magnitude
        else:
            y = jnp.maximum(pre, 0.0)
    out = y @ params["w_lin"].T + params["b_lin"]
    if classification:
        out = jax.nn.softmax(out, axis=-1)
    return out


def init_params(key, input_size, hidden_size, output_size):
    """Deterministic uniform(-1/sqrt(H), 1/sqrt(H)) init (PyTorch-style shapes)."""
    ks = jax.random.split(key, 6)
    bh = 1.0 / jnp.sqrt(hidden_size)
    return {
        "w_ih": jax.random.uniform(ks[0], (hidden_size, input_size), jnp.float32, -bh, bh),
        "w_hh": jax.random.uniform(ks[1], (hidden_size, hidden_size), jnp.float32, -bh, bh),
        "b_ih": jax.random.uniform(ks[2], (hidden_size,), jnp.float32, -bh, bh),
        "b_hh": jax.random.uniform(ks[3], (hidden_size,), jnp.float32, -bh, bh),
        "w_lin": jax.random.uniform(ks[4], (output_size, hidden_size), jnp.float32, -bh, bh),
        "b_lin": jax.random.uniform(ks[5], (output_size,), jnp.float32, -bh, bh),
    }


if __name__ == "__main__":
    T, B, I, H, O = 8, 4, 16, 32, 8
    key = jax.random.PRNGKey(0)
    k_x, k_p = jax.random.split(key)
    x = jax.random.normal(k_x, (T, B, I), jnp.float32)
    params = init_params(k_p, I, H, O)

    # Exercise all activation / classification branches and both the single
    # time-block and multi-time-block (resident accumulator) paths.  bf16
    # compute paths use a scale-normalized tolerance vs the f32 reference; the
    # tanh(+softmax) path uses f32 compute (its *255 dynamics amplify bf16
    # rounding beyond a meaningful comparison against an f32 reference).
    tests = [
        dict(activation_function="relu", classification=False,
             compute_dtype=jnp.bfloat16, time_block=None, atol=5e-2, rtol=3e-2),
        dict(activation_function="relu", classification=False,
             compute_dtype=jnp.bfloat16, time_block=2, atol=5e-2, rtol=3e-2),
        dict(activation_function="custom", classification=False,
             compute_dtype=jnp.bfloat16, time_block=None, atol=5e-2, rtol=3e-2),
        dict(activation_function="tanh", classification=True,
             compute_dtype=jnp.float32, time_block=4, atol=1e-2, rtol=1e-2),
    ]
    for cfg in tests:
        atol, rtol = cfg.pop("atol"), cfg.pop("rtol")
        dtype = cfg.pop("compute_dtype")
        tb = cfg.pop("time_block")
        out = rnn_forward(x, params, sigma_magnitude=255.0,
                          compute_dtype=dtype, time_block=tb, **cfg)
        out = jax.block_until_ready(out)
        ref = _reference(x, params, sigma_magnitude=255.0, **cfg)
        assert out.shape == (B, O)
        err = float(jnp.max(jnp.abs(out - ref)))
        scale = float(jnp.max(jnp.abs(ref)))
        assert err <= atol + rtol * scale, (
            f"mismatch for {cfg}: max abs err {err} (ref scale {scale})")

    print("KERNEL_OK")
</pallas_src>

<mosaic_0001>
module attributes {stable_mosaic.version = 11 : i64} {
  func.func @_recurrent_kernel(%arg0: i32, %arg1: i32, %arg2: memref<8x8x128xbf16, #tpu.memory_space<vmem>>, %arg3: memref<128x128xbf16, #tpu.memory_space<vmem>>, %arg4: memref<1x128xf32, #tpu.memory_space<vmem>>, %arg5: memref<128x128xbf16, #tpu.memory_space<vmem>>, %arg6: memref<8x128xf32, #tpu.memory_space<vmem>>) attributes {dimension_semantics = [#tpu.dimension_semantics<parallel>, #tpu.dimension_semantics<arbitrary>], iteration_bounds = array<i64: 1, 1>, scalar_prefetch = 0 : i64, scratch_operands = 0 : i64, tpu.core_type = #tpu.core_type<tc>, window_params = [{transform_indices = @transform_0, window_bounds = array<i64: 8, 8, 128>}, {pipeline_mode = #tpu.pipeline_mode<synchronous>, transform_indices = @transform_1, window_bounds = array<i64: 128, 128>}, {pipeline_mode = #tpu.pipeline_mode<synchronous>, transform_indices = @transform_2, window_bounds = array<i64: 1, 128>}, {pipeline_mode = #tpu.pipeline_mode<synchronous>, transform_indices = @transform_3, window_bounds = array<i64: 128, 128>}, {transform_indices = @transform_4, window_bounds = array<i64: 8, 128>}]} {
    %c0_i32 = arith.constant 0 : i32
    %0 = arith.cmpi eq, %arg1, %c0_i32 : i32
    %1 = arith.extui %0 : i1 to i32
    %c0_i32_0 = arith.constant 0 : i32
    %2 = arith.cmpi ne, %1, %c0_i32_0 : i32
    scf.if %2 {
      %cst_92 = arith.constant 0.000000e+00 : f32
      %117 = vector.broadcast %cst_92 : f32 to vector<8x128xf32>
      %c0_93 = arith.constant 0 : index
      %c0_94 = arith.constant 0 : index
      %118 = vector.load %arg6[%c0_93, %c0_94] : memref<8x128xf32, #tpu.memory_space<vmem>>, vector<8x128xf32>
      tpu.vector_store %arg6[%c0_93, %c0_94], %117 {strides = array<i32>} : memref<8x128xf32, #tpu.memory_space<vmem>>, vector<8x128xf32>,
    } else {
    }
    %c0 = arith.constant 0 : index
    %c0_1 = arith.constant 0 : index
    %3 = vector.load %arg6[%c0, %c0_1] : memref<8x128xf32, #tpu.memory_space<vmem>>, vector<8x128xf32>
    %c0_i32_2 = arith.constant 0 : i32
    %4 = arith.index_cast %c0_i32_2 : i32 to index
    %c0_3 = arith.constant 0 : index
    %c0_4 = arith.constant 0 : index
    %5 = vector.load %arg2[%4, %c0_3, %c0_4] : memref<8x8x128xbf16, #tpu.memory_space<vmem>>, vector<1x8x128xbf16>
    %6 = vector.shape_cast %5 : vector<1x8x128xbf16> to vector<8x128xbf16>
    %c0_5 = arith.constant 0 : index
    %c0_6 = arith.constant 0 : index
    %7 = vector.load %arg3[%c0_5, %c0_6] : memref<128x128xbf16, #tpu.memory_space<vmem>>, vector<128x128xbf16>
    %cst = arith.constant dense<0.000000e+00> : vector<8x128xf32>
    %8 = tpu.matmul %6, %7, %cst {dimension_numbers = #tpu.dot_dimension_numbers<[1], [0], [0], [1], [0, 0, 1, 1], [], []>} : vector<8x128xbf16>, vector<128x128xbf16>, vector<8x128xf32> -> vector<8x128xf32>
    %c0_7 = arith.constant 0 : index
    %c0_8 = arith.constant 0 : index
    %9 = vector.load %arg4[%c0_7, %c0_8] : memref<1x128xf32, #tpu.memory_space<vmem>>, vector<1x128xf32>
    %10 = vector.broadcast %9 : vector<1x128xf32> to vector<8x128xf32>
    %11 = arith.addf %8, %10 : vector<8x128xf32>
    %12 = arith.truncf %3 : vector<8x128xf32> to vector<8x128xbf16>
    %c0_9 = arith.constant 0 : index
    %c0_10 = arith.constant 0 : index
    %13 = vector.load %arg5[%c0_9, %c0_10] : memref<128x128xbf16, #tpu.memory_space<vmem>>, vector<128x128xbf16>
    %cst_11 = arith.constant dense<0.000000e+00> : vector<8x128xf32>
    %14 = tpu.matmul %12, %13, %cst_11 {dimension_numbers = #tpu.dot_dimension_numbers<[1], [0], [0], [1], [0, 0, 1, 1], [], []>} : vector<8x128xbf16>, vector<128x128xbf16>, vector<8x128xf32> -> vector<8x128xf32>
    %15 = arith.addf %11, %14 : vector<8x128xf32>
    %cst_12 = arith.constant 0.000000e+00 : f32
    %16 = vector.broadcast %cst_12 : f32 to vector<8x128xf32>
    %17 = arith.maximumf %15, %16 : vector<8x128xf32>
    %c1_i32 = arith.constant 1 : i32
    %18 = arith.index_cast %c1_i32 : i32 to index
    %c0_13 = arith.constant 0 : index
    %c0_14 = arith.constant 0 : index
    %19 = vector.load %arg2[%18, %c0_13, %c0_14] : memref<8x8x128xbf16, #tpu.memory_space<vmem>>, vector<1x8x128xbf16>
    %20 = vector.shape_cast %19 : vector<1x8x128xbf16> to vector<8x128xbf16>
    %c0_15 = arith.constant 0 : index
    %c0_16 = arith.constant 0 : index
    %21 = vector.load %arg3[%c0_15, %c0_16] : memref<128x128xbf16, #tpu.memory_space<vmem>>, vector<128x128xbf16>
    %cst_17 = arith.constant dense<0.000000e+00> : vector<8x128xf32>
    %22 = tpu.matmul %20, %21, %cst_17 {dimension_numbers = #tpu.dot_dimension_numbers<[1], [0], [0], [1], [0, 0, 1, 1], [], []>} : vector<8x128xbf16>, vector<128x128xbf16>, vector<8x128xf32> -> vector<8x128xf32>
    %c0_18 = arith.constant 0 : index
    %c0_19 = arith.constant 0 : index
    %23 = vector.load %arg4[%c0_18, %c0_19] : memref<1x128xf32, #tpu.memory_space<vmem>>, vector<1x128xf32>
    %24 = vector.broadcast %23 : vector<1x128xf32> to vector<8x128xf32>
    %25 = arith.addf %22, %24 : vector<8x128xf32>
    %26 = arith.truncf %17 : vector<8x128xf32> to vector<8x128xbf16>
    %c0_20 = arith.constant 0 : index
    %c0_21 = arith.constant 0 : index
    %27 = vector.load %arg5[%c0_20, %c0_21] : memref<128x128xbf16, #tpu.memory_space<vmem>>, vector<128x128xbf16>
    %cst_22 = arith.constant dense<0.000000e+00> : vector<8x128xf32>
    %28 = tpu.matmul %26, %27, %cst_22 {dimension_numbers = #tpu.dot_dimension_numbers<[1], [0], [0], [1], [0, 0, 1, 1], [], []>} : vector<8x128xbf16>, vector<128x128xbf16>, vector<8x128xf32> -> vector<8x128xf32>
    %29 = arith.addf %25, %28 : vector<8x128xf32>
    %cst_23 = arith.constant 0.000000e+00 : f32
    %30 = vector.broadcast %cst_23 : f32 to vector<8x128xf32>
    %31 = arith.maximumf %29, %30 : vector<8x128xf32>
    %c2_i32 = arith.constant 2 : i32
    %32 = arith.index_cast %c2_i32 : i32 to index
    %c0_24 = arith.constant 0 : index
    %c0_25 = arith.constant 0 : index
    %33 = vector.load %arg2[%32, %c0_24, %c0_25] : memref<8x8x128xbf16, #tpu.memory_space<vmem>>, vector<1x8x128xbf16>
    %34 = vector.shape_cast %33 : vector<1x8x128xbf16> to vector<8x128xbf16>
    %c0_26 = arith.constant 0 : index
    %c0_27 = arith.constant 0 : index
    %35 = vector.load %arg3[%c0_26, %c0_27] : memref<128x128xbf16, #tpu.memory_space<vmem>>, vector<128x128xbf16>
    %cst_28 = arith.constant dense<0.000000e+00> : vector<8x128xf32>
    %36 = tpu.matmul %34, %35, %cst_28 {dimension_numbers = #tpu.dot_dimension_numbers<[1], [0], [0], [1], [0, 0, 1, 1], [], []>} : vector<8x128xbf16>, vector<128x128xbf16>, vector<8x128xf32> -> vector<8x128xf32>
    %c0_29 = arith.constant 0 : index
    %c0_30 = arith.constant 0 : index
    %37 = vector.load %arg4[%c0_29, %c0_30] : memref<1x128xf32, #tpu.memory_space<vmem>>, vector<1x128xf32>
    %38 = vector.broadcast %37 : vector<1x128xf32> to vector<8x128xf32>
    %39 = arith.addf %36, %38 : vector<8x128xf32>
    %40 = arith.truncf %31 : vector<8x128xf32> to vector<8x128xbf16>
    %c0_31 = arith.constant 0 : index
    %c0_32 = arith.constant 0 : index
    %41 = vector.load %arg5[%c0_31, %c0_32] : memref<128x128xbf16, #tpu.memory_space<vmem>>, vector<128x128xbf16>
    %cst_33 = arith.constant dense<0.000000e+00> : vector<8x128xf32>
    %42 = tpu.matmul %40, %41, %cst_33 {dimension_numbers = #tpu.dot_dimension_numbers<[1], [0], [0], [1], [0, 0, 1, 1], [], []>} : vector<8x128xbf16>, vector<128x128xbf16>, vector<8x128xf32> -> vector<8x128xf32>
    %43 = arith.addf %39, %42 : vector<8x128xf32>
    %cst_34 = arith.constant 0.000000e+00 : f32
    %44 = vector.broadcast %cst_34 : f32 to vector<8x128xf32>
    %45 = arith.maximumf %43, %44 : vector<8x128xf32>
    %c3_i32 = arith.constant 3 : i32
    %46 = arith.index_cast %c3_i32 : i32 to index
    %c0_35 = arith.constant 0 : index
    %c0_36 = arith.constant 0 : index
    %47 = vector.load %arg2[%46, %c0_35, %c0_36] : memref<8x8x128xbf16, #tpu.memory_space<vmem>>, vector<1x8x128xbf16>
    %48 = vector.shape_cast %47 : vector<1x8x128xbf16> to vector<8x128xbf16>
    %c0_37 = arith.constant 0 : index
    %c0_38 = arith.constant 0 : index
    %49 = vector.load %arg3[%c0_37, %c0_38] : memref<128x128xbf16, #tpu.memory_space<vmem>>, vector<128x128xbf16>
    %cst_39 = arith.constant dense<0.000000e+00> : vector<8x128xf32>
    %50 = tpu.matmul %48, %49, %cst_39 {dimension_numbers = #tpu.dot_dimension_numbers<[1], [0], [0], [1], [0, 0, 1, 1], [], []>} : vector<8x128xbf16>, vector<128x128xbf16>, vector<8x128xf32> -> vector<8x128xf32>
    %c0_40 = arith.constant 0 : index
    %c0_41 = arith.constant 0 : index
    %51 = vector.load %arg4[%c0_40, %c0_41] : memref<1x128xf32, #tpu.memory_space<vmem>>, vector<1x128xf32>
    %52 = vector.broadcast %51 : vector<1x128xf32> to vector<8x128xf32>
    %53 = arith.addf %50, %52 : vector<8x128xf32>
    %54 = arith.truncf %45 : vector<8x128xf32> to vector<8x128xbf16>
    %c0_42 = arith.constant 0 : index
    %c0_43 = arith.constant 0 : index
    %55 = vector.load %arg5[%c0_42, %c0_43] : memref<128x128xbf16, #tpu.memory_space<vmem>>, vector<128x128xbf16>
    %cst_44 = arith.constant dense<0.000000e+00> : vector<8x128xf32>
    %56 = tpu.matmul %54, %55, %cst_44 {dimension_numbers = #tpu.dot_dimension_numbers<[1], [0], [0], [1], [0, 0, 1, 1], [], []>} : vector<8x128xbf16>, vector<128x128xbf16>, vector<8x128xf32> -> vector<8x128xf32>
    %57 = arith.addf %53, %56 : vector<8x128xf32>
    %cst_45 = arith.constant 0.000000e+00 : f32
    %58 = vector.broadcast %cst_45 : f32 to vector<8x128xf32>
    %59 = arith.maximumf %57, %58 : vector<8x128xf32>
    %c4_i32 = arith.constant 4 : i32
    %60 = arith.index_cast %c4_i32 : i32 to index
    %c0_46 = arith.constant 0 : index
    %c0_47 = arith.constant 0 : index
    %61 = vector.load %arg2[%60, %c0_46, %c0_47] : memref<8x8x128xbf16, #tpu.memory_space<vmem>>, vector<1x8x128xbf16>
    %62 = vector.shape_cast %61 : vector<1x8x128xbf16> to vector<8x128xbf16>
    %c0_48 = arith.constant 0 : index
    %c0_49 = arith.constant 0 : index
    %63 = vector.load %arg3[%c0_48, %c0_49] : memref<128x128xbf16, #tpu.memory_space<vmem>>, vector<128x128xbf16>
    %cst_50 = arith.constant dense<0.000000e+00> : vector<8x128xf32>
    %64 = tpu.matmul %62, %63, %cst_50 {dimension_numbers = #tpu.dot_dimension_numbers<[1], [0], [0], [1], [0, 0, 1, 1], [], []>} : vector<8x128xbf16>, vector<128x128xbf16>, vector<8x128xf32> -> vector<8x128xf32>
    %c0_51 = arith.constant 0 : index
    %c0_52 = arith.constant 0 : index
    %65 = vector.load %arg4[%c0_51, %c0_52] : memref<1x128xf32, #tpu.memory_space<vmem>>, vector<1x128xf32>
    %66 = vector.broadcast %65 : vector<1x128xf32> to vector<8x128xf32>
    %67 = arith.addf %64, %66 : vector<8x128xf32>
    %68 = arith.truncf %59 : vector<8x128xf32> to vector<8x128xbf16>
    %c0_53 = arith.constant 0 : index
    %c0_54 = arith.constant 0 : index
    %69 = vector.load %arg5[%c0_53, %c0_54] : memref<128x128xbf16, #tpu.memory_space<vmem>>, vector<128x128xbf16>
    %cst_55 = arith.constant dense<0.000000e+00> : vector<8x128xf32>
    %70 = tpu.matmul %68, %69, %cst_55 {dimension_numbers = #tpu.dot_dimension_numbers<[1], [0], [0], [1], [0, 0, 1, 1], [], []>} : vector<8x128xbf16>, vector<128x128xbf16>, vector<8x128xf32> -> vector<8x128xf32>
    %71 = arith.addf %67, %70 : vector<8x128xf32>
    %cst_56 = arith.constant 0.000000e+00 : f32
    %72 = vector.broadcast %cst_56 : f32 to vector<8x128xf32>
    %73 = arith.maximumf %71, %72 : vector<8x128xf32>
    %c5_i32 = arith.constant 5 : i32
    %74 = arith.index_cast %c5_i32 : i32 to index
    %c0_57 = arith.constant 0 : index
    %c0_58 = arith.constant 0 : index
    %75 = vector.load %arg2[%74, %c0_57, %c0_58] : memref<8x8x128xbf16, #tpu.memory_space<vmem>>, vector<1x8x128xbf16>
    %76 = vector.shape_cast %75 : vector<1x8x128xbf16> to vector<8x128xbf16>
    %c0_59 = arith.constant 0 : index
    %c0_60 = arith.constant 0 : index
    %77 = vector.load %arg3[%c0_59, %c0_60] : memref<128x128xbf16, #tpu.memory_space<vmem>>, vector<128x128xbf16>
    %cst_61 = arith.constant dense<0.000000e+00> : vector<8x128xf32>
    %78 = tpu.matmul %76, %77, %cst_61 {dimension_numbers = #tpu.dot_dimension_numbers<[1], [0], [0], [1], [0, 0, 1, 1], [], []>} : vector<8x128xbf16>, vector<128x128xbf16>, vector<8x128xf32> -> vector<8x128xf32>
    %c0_62 = arith.constant 0 : index
    %c0_63 = arith.constant 0 : index
    %79 = vector.load %arg4[%c0_62, %c0_63] : memref<1x128xf32, #tpu.memory_space<vmem>>, vector<1x128xf32>
    %80 = vector.broadcast %79 : vector<1x128xf32> to vector<8x128xf32>
    %81 = arith.addf %78, %80 : vector<8x128xf32>
    %82 = arith.truncf %73 : vector<8x128xf32> to vector<8x128xbf16>
    %c0_64 = arith.constant 0 : index
    %c0_65 = arith.constant 0 : index
    %83 = vector.load %arg5[%c0_64, %c0_65] : memref<128x128xbf16, #tpu.memory_space<vmem>>, vector<128x128xbf16>
    %cst_66 = arith.constant dense<0.000000e+00> : vector<8x128xf32>
    %84 = tpu.matmul %82, %83, %cst_66 {dimension_numbers = #tpu.dot_dimension_numbers<[1], [0], [0], [1], [0, 0, 1, 1], [], []>} : vector<8x128xbf16>, vector<128x128xbf16>, vector<8x128xf32> -> vector<8x128xf32>
    %85 = arith.addf %81, %84 : vector<8x128xf32>
    %cst_67 = arith.constant 0.000000e+00 : f32
    %86 = vector.broadcast %cst_67 : f32 to vector<8x128xf32>
    %87 = arith.maximumf %85, %86 : vector<8x128xf32>
    %c6_i32 = arith.constant 6 : i32
    %88 = arith.index_cast %c6_i32 : i32 to index
    %c0_68 = arith.constant 0 : index
    %c0_69 = arith.constant 0 : index
    %89 = vector.load %arg2[%88, %c0_68, %c0_69] : memref<8x8x128xbf16, #tpu.memory_space<vmem>>, vector<1x8x128xbf16>
    %90 = vector.shape_cast %89 : vector<1x8x128xbf16> to vector<8x128xbf16>
    %c0_70 = arith.constant 0 : index
    %c0_71 = arith.constant 0 : index
    %91 = vector.load %arg3[%c0_70, %c0_71] : memref<128x128xbf16, #tpu.memory_space<vmem>>, vector<128x128xbf16>
    %cst_72 = arith.constant dense<0.000000e+00> : vector<8x128xf32>
    %92 = tpu.matmul %90, %91, %cst_72 {dimension_numbers = #tpu.dot_dimension_numbers<[1], [0], [0], [1], [0, 0, 1, 1], [], []>} : vector<8x128xbf16>, vector<128x128xbf16>, vector<8x128xf32> -> vector<8x128xf32>
    %c0_73 = arith.constant 0 : index
    %c0_74 = arith.constant 0 : index
    %93 = vector.load %arg4[%c0_73, %c0_74] : memref<1x128xf32, #tpu.memory_space<vmem>>, vector<1x128xf32>
    %94 = vector.broadcast %93 : vector<1x128xf32> to vector<8x128xf32>
    %95 = arith.addf %92, %94 : vector<8x128xf32>
    %96 = arith.truncf %87 : vector<8x128xf32> to vector<8x128xbf16>
    %c0_75 = arith.constant 0 : index
    %c0_76 = arith.constant 0 : index
    %97 = vector.load %arg5[%c0_75, %c0_76] : memref<128x128xbf16, #tpu.memory_space<vmem>>, vector<128x128xbf16>
    %cst_77 = arith.constant dense<0.000000e+00> : vector<8x128xf32>
    %98 = tpu.matmul %96, %97, %cst_77 {dimension_numbers = #tpu.dot_dimension_numbers<[1], [0], [0], [1], [0, 0, 1, 1], [], []>} : vector<8x128xbf16>, vector<128x128xbf16>, vector<8x128xf32> -> vector<8x128xf32>
    %99 = arith.addf %95, %98 : vector<8x128xf32>
    %cst_78 = arith.constant 0.000000e+00 : f32
    %100 = vector.broadcast %cst_78 : f32 to vector<8x128xf32>
    %101 = arith.maximumf %99, %100 : vector<8x128xf32>
    %c7_i32 = arith.constant 7 : i32
    %102 = arith.index_cast %c7_i32 : i32 to index
    %c0_79 = arith.constant 0 : index
    %c0_80 = arith.constant 0 : index
    %103 = vector.load %arg2[%102, %c0_79, %c0_80] : memref<8x8x128xbf16, #tpu.memory_space<vmem>>, vector<1x8x128xbf16>
    %104 = vector.shape_cast %103 : vector<1x8x128xbf16> to vector<8x128xbf16>
    %c0_81 = arith.constant 0 : index
    %c0_82 = arith.constant 0 : index
    %105 = vector.load %arg3[%c0_81, %c0_82] : memref<128x128xbf16, #tpu.memory_space<vmem>>, vector<128x128xbf16>
    %cst_83 = arith.constant dense<0.000000e+00> : vector<8x128xf32>
    %106 = tpu.matmul %104, %105, %cst_83 {dimension_numbers = #tpu.dot_dimension_numbers<[1], [0], [0], [1], [0, 0, 1, 1], [], []>} : vector<8x128xbf16>, vector<128x128xbf16>, vector<8x128xf32> -> vector<8x128xf32>
    %c0_84 = arith.constant 0 : index
    %c0_85 = arith.constant 0 : index
    %107 = vector.load %arg4[%c0_84, %c0_85] : memref<1x128xf32, #tpu.memory_space<vmem>>, vector<1x128xf32>
    %108 = vector.broadcast %107 : vector<1x128xf32> to vector<8x128xf32>
    %109 = arith.addf %106, %108 : vector<8x128xf32>
    %110 = arith.truncf %101 : vector<8x128xf32> to vector<8x128xbf16>
    %c0_86 = arith.constant 0 : index
    %c0_87 = arith.constant 0 : index
    %111 = vector.load %arg5[%c0_86, %c0_87] : memref<128x128xbf16, #tpu.memory_space<vmem>>, vector<128x128xbf16>
    %cst_88 = arith.constant dense<0.000000e+00> : vector<8x128xf32>
    %112 = tpu.matmul %110, %111, %cst_88 {dimension_numbers = #tpu.dot_dimension_numbers<[1], [0], [0], [1], [0, 0, 1, 1], [], []>} : vector<8x128xbf16>, vector<128x128xbf16>, vector<8x128xf32> -> vector<8x128xf32>
    %113 = arith.addf %109, %112 : vector<8x128xf32>
    %cst_89 = arith.constant 0.000000e+00 : f32
    %114 = vector.broadcast %cst_89 : f32 to vector<8x128xf32>
    %115 = arith.maximumf %113, %114 : vector<8x128xf32>
    %c8_i32 = arith.constant 8 : i32
    %c0_90 = arith.constant 0 : index
    %c0_91 = arith.constant 0 : index
    %116 = vector.load %arg6[%c0_90, %c0_91] : memref<8x128xf32, #tpu.memory_space<vmem>>, vector<8x128xf32>
    tpu.vector_store %arg6[%c0_90, %c0_91], %115 {strides = array<i32>} : memref<8x128xf32, #tpu.memory_space<vmem>>, vector<8x128xf32>,
    return
  }
  func.func @transform_0(%arg0: i32, %arg1: i32) -> (i32, i32, i32) {
    %c0_i32 = arith.constant 0 : i32
    %c0_i32_0 = arith.constant 0 : i32
    return %arg1, %arg0, %c0_i32 : i32, i32, i32
  }
  func.func @transform_1(%arg0: i32, %arg1: i32) -> (i32, i32) {
    %c0_i32 = arith.constant 0 : i32
    %c0_i32_0 = arith.constant 0 : i32
    %c0_i32_1 = arith.constant 0 : i32
    return %c0_i32, %c0_i32_0 : i32, i32
  }
  func.func @transform_2(%arg0: i32, %arg1: i32) -> (i32, i32) {
    %c0_i32 = arith.constant 0 : i32
    %c0_i32_0 = arith.constant 0 : i32
    %c0_i32_1 = arith.constant 0 : i32
    return %c0_i32, %c0_i32_0 : i32, i32
  }
  func.func @transform_3(%arg0: i32, %arg1: i32) -> (i32, i32) {
    %c0_i32 = arith.constant 0 : i32
    %c0_i32_0 = arith.constant 0 : i32
    %c0_i32_1 = arith.constant 0 : i32
    return %c0_i32, %c0_i32_0 : i32, i32
  }
  func.func @transform_4(%arg0: i32, %arg1: i32) -> (i32, i32) {
    %c0_i32 = arith.constant 0 : i32
    %c0_i32_0 = arith.constant 0 : i32
    return %arg0, %c0_i32 : i32, i32
  }
}

</mosaic_0001>

<bundles_post_ra>
// kernel: tpu_custom_call.1
= control target key start
LH: loop header
LB: loop body
LE: loop exit
PB: predicated region body
PF: predicated region fallthrough
CT: control target
= control target key end

     0   :  { %9 = vsyncpa [#allocation3], 0  ;;  %s1967_s0 = inlined_call_operand.hbm [shape: bf16[8,8,128], index: 0, kind: input, shape index: {}]   ;;  %s1968_s1 = inlined_call_operand.hbm [shape: bf16[128,128], index: 1, kind: input, shape index: {}]   ;;  %s1969_s2 = inlined_call_operand.vmem [shape: f32[1,128], index: 2, kind: input, shape index: {}]   ;;  %s1970_s3 = inlined_call_operand.hbm [shape: bf16[128,128], index: 3, kind: input, shape index: {}]   ;;  %s1971_s4 = inlined_call_operand.hbm [shape: f32[8,128], index: 4, kind: output, shape index: {}]  }
   0x1   :  { %10 = vsyncpa [#allocation6], 0 }
   0x2   :  { %11 = vsyncpa [#allocation4], 0  ;;  %s1536_s15 = smov [#allocation5]   ;;  %s1537_s17 = smov [#allocation2]  }
   0x3   :  { %s29_s16 = sshll.u32 %s1536_s15, 4  ;;  %s17_s18 = sshll.u32 %s1537_s17, 4  ;;  %s30_s16 = int_to_ptr.vmem [resolvable:$true] %s29_s16  ;;  %s1570_s18 = int_to_ptr.vmem [resolvable:$true] %s17_s18 }
   0x4   :  { %s1442_s21 = scalar_lea.hbm %s1968_s1, 1024 }
   0x5   :  { %p1443_p0 = scmp.ne.s32.totalorder %s1968_s1, %s1442_s21  ;;  %p1446_p1 = scmp.lt.u32.totalorder %s1442_s21, %s1968_s1 }
   0x7   :  { %p1448_p2 = pnand %p1446_p1, %p1443_p0 }
   0x9   :  { %1451 = shalt.err (!%p1448_p2)
}
   0xa   :  { %s1452_s26 = scalar_lea.vmem %s30_s16, 1024  ;;  %p1457_p4 = scmp.lt.s32.totalorder %s30_s16, %s30_s16 }
   0xb   :  { %p1453_p3 = scmp.ne.s32.totalorder %s30_s16, %s1452_s26  ;;  %p1458_p5 = scmp.lt.s32.totalorder %s1452_s26, %s1452_s26 }
   0xd   :  { %p1459_p6 = por %p1458_p5, %p1457_p4 }
   0xf   :  { %p1460_p7 = pnand %p1459_p6, %p1453_p3 }
  0x11   :  { %1463 = shalt.err (!%p1460_p7)
}
  0x12   :  { %s1538_s27 = smov 64   ;;  %s1539_s28 = smov 4  }
  0x13   :  { %35 = dma.hbm_to_vmem [thread:$0]  %s1968_s1, 1024, %s30_s16, [#allocation6], %s1538_s27, %s1538_s27, %s1539_s28  }
  0x14   :  { %s1464_s7 = scalar_lea.hbm %s1967_s0, 512 }
  0x15   :  { %p1465_p8 = scmp.ne.s32.totalorder %s1967_s0, %s1464_s7  ;;  %p1468_p9 = scmp.lt.u32.totalorder %s1464_s7, %s1967_s0 }
  0x17   :  { %p1470_p10 = pnand %p1468_p9, %p1465_p8 }
  0x19   :  { %1473 = shalt.err (!%p1470_p10)
}
  0x1a   :  { %s1474_s12 = scalar_lea.vmem %s1570_s18, 512  ;;  %p1479_p12 = scmp.lt.s32.totalorder %s1570_s18, %s1570_s18 }
  0x1b   :  { %p1475_p11 = scmp.ne.s32.totalorder %s1570_s18, %s1474_s12  ;;  %p1480_p13 = scmp.lt.s32.totalorder %s1474_s12, %s1474_s12 }
  0x1d   :  { %p1481_p0 = por %p1480_p13, %p1479_p12 }
  0x1f   :  { %p1482_p1 = pnand %p1481_p0, %p1475_p11 }
  0x21   :  { %1485 = shalt.err (!%p1482_p1)
}
  0x22   :  { %23 = dma.hbm_to_vmem [thread:$0]  %s1967_s0, 512, %s1570_s18, [#allocation3], %s1538_s27, %s1538_s27, %s1539_s28  }
  0x23   :  { %s1540_s14 = smov [#allocation7]   ;;  %s1486_s19 = scalar_lea.hbm %s1970_s3, 1024 }
  0x24   :  { %s43_s15 = sshll.u32 %s1540_s14, 4  ;;  %p1487_p2 = scmp.ne.s32.totalorder %s1970_s3, %s1486_s19  ;;  %s44_s15 = int_to_ptr.vmem [resolvable:$true] %s43_s15 }
  0x25   :  { %p1490_p3 = scmp.lt.u32.totalorder %s1486_s19, %s1970_s3 }
  0x27   :  { %p1492_p4 = pnand %p1490_p3, %p1487_p2 }
  0x29   :  { %1495 = shalt.err (!%p1492_p4)
}
  0x2a   :  { %s1496_s24 = scalar_lea.vmem %s44_s15, 1024  ;;  %p1501_p6 = scmp.lt.s32.totalorder %s44_s15, %s44_s15 }
  0x2b   :  { %p1497_p5 = scmp.ne.s32.totalorder %s44_s15, %s1496_s24  ;;  %p1502_p7 = scmp.lt.s32.totalorder %s1496_s24, %s1496_s24 }
  0x2d   :  { %p1503_p8 = por %p1502_p7, %p1501_p6 }
  0x2f   :  { %p1504_p9 = pnand %p1503_p8, %p1497_p5 }
  0x31   :  { %1507 = shalt.err (!%p1504_p9)
}
  0x32   :  { %49 = dma.hbm_to_vmem [thread:$0]  %s1970_s3, 1024, %s44_s15, [#allocation6], %s1538_s27, %s1538_s27, %s1539_s28  }
  0x33   :  { %1530 = dma.done.wait [#allocation3], 512  }
  0x34   :  { %1531 = vsyncadd [#allocation3], 4294966784 }
  0x35   :  { %1532 = dma.done.wait [#allocation6], 2048  }
  0x36   :  { %1533 = vsyncadd [#allocation6], 4294965248  ;;  %v1541_v0 = vmov 0.0   ;;  %vm1542_vm0 = vmmov 0   ;;  %v1628_v1 = vld [vmem:[#allocation5] sm:$0xff]   ;;  %v1631_v2 = vld [vmem:[#allocation5 + $0x8] sm:$0xff]  }
  0x37   :  { %1058 = vmatprep.subr.bf16.mxu0 %v1541_v0  ;;  %1074 = vmatprep.mubr.msk.bf16.mxu0 %vm1542_vm0, %v1541_v0  ;;  %v1637_v3 = vld [vmem:[#allocation5 + $0x10] sm:$0xff]   ;;  %v1643_v4 = vld [vmem:[#allocation5 + $0x18] sm:$0xff]   ;;  %v1649_v5 = vld [vmem:[#allocation5 + $0x20] sm:$0xff]   ;;  %v1543_v19 = vmov 0.0|0.0  }
  0x38   :  { %1098 = vmatprep.subr.bf16.mxu1 %v1541_v0  ;;  %1114 = vmatprep.mubr.msk.bf16.mxu1 %vm1542_vm0, %v1541_v0  ;;  %v1655_v6 = vld [vmem:[#allocation5 + $0x28] sm:$0xff]   ;;  %v1661_v7 = vld [vmem:[#allocation5 + $0x30] sm:$0xff]   ;;  %v1667_v8 = vld [vmem:[#allocation5 + $0x38] sm:$0xff]  }
  0x39   :  { %1059 = vmatpush3.bf16.msra.mxu0 %v1628_v1  ;;  %1099 = vmatpush3.bf16.msra.mxu1 %v1628_v1  ;;  %v66_v9 = vld [vmem:[#allocation2] sm:$0xf]  ;;  %v286_v11 = vld [vmem:[#allocation2 + $0x4] sm:$0xf]  ;;  %v1679_v12 = vld [vmem:[#allocation7 + $0x8] sm:$0xff]  }
  0x3a   :  { %1060 = vmatprep.subr.bf16.mxu0 %v1541_v0  ;;  %1100 = vmatprep.subr.bf16.mxu1 %v1541_v0  ;;  %v1673_v10 = vld [vmem:[#allocation7] sm:$0xff]   ;;  %v1689_v13 = vld [vmem:[#allocation7 + $0x10] sm:$0xff]   ;;  %v1695_v14 = vld [vmem:[#allocation7 + $0x18] sm:$0xff]  }
  0x3b   :  { %v1701_v15 = vld [vmem:[#allocation7 + $0x20] sm:$0xff]   ;;  %v1707_v16 = vld [vmem:[#allocation7 + $0x28] sm:$0xff]   ;;  %v1713_v17 = vld [vmem:[#allocation7 + $0x30] sm:$0xff]  }
  0x3c   :  { %v1719_v18 = vld [vmem:[#allocation7 + $0x38] sm:$0xff]   ;;  %v371_v20 = vld [vmem:[#allocation2 + $0x8] sm:$0xf]  ;;  %v1767_v21 = vld [vmem:[%s1969_s2] ss:$0 sm:$0xff]  ;;  %s1544_s2 = smov [#allocation8]  }
  0x3d   :  { %1061 = vmatpush3.bf16.msra.mxu0 %v1631_v2  ;;  %1101 = vmatpush3.bf16.msra.mxu1 %v1631_v2  ;;  %v456_v29 = vld [vmem:[#allocation2 + $0xc] sm:$0xf]  ;;  %v541_v37 = vld [vmem:[#allocation2 + $0x10] sm:$0xf]  ;;  %v626_v45 = vld [vmem:[#allocation2 + $0x14] sm:$0xf] }
  0x3e   :  { %1062 = vmatprep.subr.bf16.mxu0 %v1541_v0  ;;  %1102 = vmatprep.subr.bf16.mxu1 %v1541_v0  ;;  %v711_v53 = vld [vmem:[#allocation2 + $0x18] sm:$0xf]  ;;  %v796_v61 = vld [vmem:[#allocation2 + $0x1c] sm:$0xf]  ;;  %s887_s26 = sshll.u32 %s1544_s2, 4  ;;  %s888_s26 = int_to_ptr.vmem [resolvable:$true] %s887_s26 }
  0x3f   :  { %s1508_s27 = scalar_lea.vmem %s888_s26, 128  ;;  %p1513_p11 = scmp.lt.s32.totalorder %s888_s26, %s888_s26 }
  0x40   :  { %p1509_p10 = scmp.ne.s32.totalorder %s888_s26, %s1508_s27  ;;  %p1514_p12 = scmp.lt.s32.totalorder %s1508_s27, %s1508_s27 }
  0x41   :  { %1063 = vmatpush3.bf16.msra.mxu0 %v1637_v3  ;;  %1103 = vmatpush3.bf16.msra.mxu1 %v1637_v3 }
  0x42   :  { %1064 = vmatprep.subr.bf16.mxu0 %v1541_v0  ;;  %1104 = vmatprep.subr.bf16.mxu1 %v1541_v0  ;;  %p1515_p13 = por %p1514_p12, %p1513_p11 }
  0x44   :  { %p1516_p0 = pnand %p1515_p13, %p1509_p10 }
  0x45   :  { %1065 = vmatpush3.bf16.msra.mxu0 %v1643_v4  ;;  %1105 = vmatpush3.bf16.msra.mxu1 %v1643_v4 }
  0x46   :  { %1066 = vmatprep.subr.bf16.mxu0 %v1541_v0  ;;  %1106 = vmatprep.subr.bf16.mxu1 %v1541_v0 }
  0x49   :  { %1067 = vmatpush3.bf16.msra.mxu0 %v1649_v5  ;;  %1107 = vmatpush3.bf16.msra.mxu1 %v1649_v5 }
  0x4a   :  { %1068 = vmatprep.subr.bf16.mxu0 %v1541_v0  ;;  %1108 = vmatprep.subr.bf16.mxu1 %v1541_v0 }
  0x4d   :  { %1069 = vmatpush3.bf16.msra.mxu0 %v1655_v6  ;;  %1109 = vmatpush3.bf16.msra.mxu1 %v1655_v6 }
  0x4e   :  { %1070 = vmatprep.subr.bf16.mxu0 %v1541_v0  ;;  %1110 = vmatprep.subr.bf16.mxu1 %v1541_v0 }
  0x51   :  { %1071 = vmatpush3.bf16.msra.mxu0 %v1661_v7  ;;  %1111 = vmatpush3.bf16.msra.mxu1 %v1661_v7 }
  0x52   :  { %1072 = vmatprep.subr.bf16.mxu0 %v1541_v0  ;;  %1112 = vmatprep.subr.bf16.mxu1 %v1541_v0 }
  0x55   :  { %1073 = vmatpush3.bf16.msra.mxu0 %v1667_v8  ;;  %1113 = vmatpush3.bf16.msra.mxu1 %v1667_v8 }
  0x56   :  { %1078 = vmatprep.subr.bf16.mxu0 %v1541_v0  ;;  %1118 = vmatprep.subr.bf16.mxu1 %v1541_v0 }
  0x58   :  { %1075 = vmatmul.mubr.bf16.vlgmr.msra.gmra.mrb[0].mxu0 %v66_v9  ;;  %1115 = vmatmul.mubr.bf16.vlgmr.msra.gmra.mrb[0].mxu1 %v286_v11 }
  0x59   :  { %1079 = vmatpush3.bf16.msra.mxu0 %v1673_v10  ;;  %1094 = vmatprep.mubr.msk.bf16.mxu0 %vm1542_vm0, %v1541_v0 }
  0x5a   :  { %1080 = vmatprep.subr.bf16.mxu0 %v1541_v0  ;;  %1119 = vmatpush3.bf16.msra.mxu1 %v1673_v10 }
  0x5b   :  { %1120 = vmatprep.subr.bf16.mxu1 %v1541_v0  ;;  %1134 = vmatprep.mubr.msk.bf16.mxu1 %vm1542_vm0, %v1541_v0 }
  0x5d   :  { %1081 = vmatpush3.bf16.msra.mxu0 %v1679_v12 }
  0x5e   :  { %1082 = vmatprep.subr.bf16.mxu0 %v1541_v0  ;;  %1121 = vmatpush3.bf16.msra.mxu1 %v1679_v12 }
  0x5f   :  { %1122 = vmatprep.subr.bf16.mxu1 %v1541_v0 }
  0x61   :  { %1083 = vmatpush3.bf16.msra.mxu0 %v1689_v13 }
  0x62   :  { %1084 = vmatprep.subr.bf16.mxu0 %v1541_v0  ;;  %1123 = vmatpush3.bf16.msra.mxu1 %v1689_v13 }
  0x63   :  { %1124 = vmatprep.subr.bf16.mxu1 %v1541_v0 }
  0x65   :  { %1085 = vmatpush3.bf16.msra.mxu0 %v1695_v14 }
  0x66   :  { %1086 = vmatprep.subr.bf16.mxu0 %v1541_v0  ;;  %1125 = vmatpush3.bf16.msra.mxu1 %v1695_v14 }
  0x67   :  { %1126 = vmatprep.subr.bf16.mxu1 %v1541_v0 }
  0x69   :  { %1087 = vmatpush3.bf16.msra.mxu0 %v1701_v15 }
  0x6a   :  { %1088 = vmatprep.subr.bf16.mxu0 %v1541_v0  ;;  %1127 = vmatpush3.bf16.msra.mxu1 %v1701_v15 }
  0x6b   :  { %1128 = vmatprep.subr.bf16.mxu1 %v1541_v0 }
  0x6d   :  { %1089 = vmatpush3.bf16.msra.mxu0 %v1707_v16 }
  0x6e   :  { %1090 = vmatprep.subr.bf16.mxu0 %v1541_v0  ;;  %1129 = vmatpush3.bf16.msra.mxu1 %v1707_v16 }
  0x6f   :  { %1130 = vmatprep.subr.bf16.mxu1 %v1541_v0 }
  0x71   :  { %1091 = vmatpush3.bf16.msra.mxu0 %v1713_v17 }
  0x72   :  { %1092 = vmatprep.subr.bf16.mxu0 %v1541_v0  ;;  %1131 = vmatpush3.bf16.msra.mxu1 %v1713_v17 }
  0x73   :  { %1132 = vmatprep.subr.bf16.mxu1 %v1541_v0 }
  0x75   :  { %1093 = vmatpush3.bf16.msra.mxu0 %v1719_v18 }
  0x76   :  { %1133 = vmatpush3.bf16.msra.mxu1 %v1719_v18  ;;  %1138 = vmatprep.subr.bf16.mxu0 %v1541_v0 }
  0x77   :  { %1178 = vmatprep.subr.bf16.mxu1 %v1541_v0 }
  0x78   :  { %1095 = vmatmul.mubr.bf16.vlgmr.msra.gmra.mrb[0].mxu0 %v1543_v19 }
  0x79   :  { %1139 = vmatpush3.bf16.msra.mxu0 %v1628_v1  ;;  %1154 = vmatprep.mubr.msk.bf16.mxu0 %vm1542_vm0, %v1541_v0 }
  0x7a   :  { %1140 = vmatprep.subr.bf16.mxu0 %v1541_v0 }
  0x7d   :  { %1141 = vmatpush3.bf16.msra.mxu0 %v1631_v2 }
  0x7e   :  { %1142 = vmatprep.subr.bf16.mxu0 %v1541_v0 }
  0x81   :  { %1143 = vmatpush3.bf16.msra.mxu0 %v1637_v3 }
  0x82   :  { %1144 = vmatprep.subr.bf16.mxu0 %v1541_v0 }
  0x85   :  { %1145 = vmatpush3.bf16.msra.mxu0 %v1643_v4 }
  0x86   :  { %1146 = vmatprep.subr.bf16.mxu0 %v1541_v0 }
  0x89   :  { %1147 = vmatpush3.bf16.msra.mxu0 %v1649_v5 }
  0x8a   :  { %1148 = vmatprep.subr.bf16.mxu0 %v1541_v0 }
  0x8d   :  { %1149 = vmatpush3.bf16.msra.mxu0 %v1655_v6 }
  0x8e   :  { %1150 = vmatprep.subr.bf16.mxu0 %v1541_v0 }
  0x91   :  { %1151 = vmatpush3.bf16.msra.mxu0 %v1661_v7 }
  0x92   :  { %1152 = vmatprep.subr.bf16.mxu0 %v1541_v0 }
  0x95   :  { %1153 = vmatpush3.bf16.msra.mxu0 %v1667_v8 }
  0x96   :  { %1158 = vmatprep.subr.bf16.mxu0 %v1541_v0 }
  0x98   :  { %1155 = vmatmul.mubr.bf16.vlgmr.msra.gmra.mrb[4].mxu0 %v371_v20 }
  0x99   :  { %1159 = vmatpush3.bf16.msra.mxu0 %v1673_v10  ;;  %1174 = vmatprep.mubr.msk.bf16.mxu0 %vm1542_vm0, %v1541_v0 }
  0x9a   :  { %1160 = vmatprep.subr.bf16.mxu0 %v1541_v0 }
  0x9d   :  { %1161 = vmatpush3.bf16.msra.mxu0 %v1679_v12 }
  0x9e   :  { %1162 = vmatprep.subr.bf16.mxu0 %v1541_v0 }
  0xa1   :  { %1163 = vmatpush3.bf16.msra.mxu0 %v1689_v13 }
  0xa2   :  { %1164 = vmatprep.subr.bf16.mxu0 %v1541_v0 }
  0xa5   :  { %1165 = vmatpush3.bf16.msra.mxu0 %v1695_v14 }
  0xa6   :  { %1166 = vmatprep.subr.bf16.mxu0 %v1541_v0 }
  0xa9   :  { %1167 = vmatpush3.bf16.msra.mxu0 %v1701_v15 }
  0xaa   :  { %1168 = vmatprep.subr.bf16.mxu0 %v1541_v0 }
  0xad   :  { %1169 = vmatpush3.bf16.msra.mxu0 %v1707_v16 }
  0xae   :  { %1170 = vmatprep.subr.bf16.mxu0 %v1541_v0 }
  0xb1   :  { %1171 = vmatpush3.bf16.msra.mxu0 %v1713_v17 }
  0xb2   :  { %1172 = vmatprep.subr.bf16.mxu0 %v1541_v0 }
  0xb5   :  { %1173 = vmatpush3.bf16.msra.mxu0 %v1719_v18 }
  0xb6   :  { %1218 = vmatprep.subr.bf16.mxu0 %v1541_v0 }
 0x14b   :  { %v277_v22 = vpop.f32.mrb[0].mxu0 }
 0x14c   :  { %v1378_v23 = vadd.f32 %v1767_v21, %v277_v22  ;;  %v1096_v24 = vpop.f32.mrb[1].mxu0 }
 0x14d   :  { %v280_v25 = vpop.f32.mrb[2].mxu0 }
 0x14e   :  { %v284_v26 = vmax.f32 %v1378_v23, 0.0  ;;  %v1097_v27 = vpop.f32.mrb[3].mxu0 }
 0x150   :  { %v327_v28 = vpack.c.bf16 %v284_v26, %v284_v26 }
 0x152   :  { %1135 = vmatmul.mubr.bf16.vlgmr.msra.gmra.mrb[0].mxu1 %v327_v28 }
 0x153   :  { %1179 = vmatpush3.bf16.msra.mxu1 %v1628_v1  ;;  %1194 = vmatprep.mubr.msk.bf16.mxu1 %vm1542_vm0, %v1541_v0 }
 0x154   :  { %1180 = vmatprep.subr.bf16.mxu1 %v1541_v0 }
 0x157   :  { %1181 = vmatpush3.bf16.msra.mxu1 %v1631_v2 }
 0x158   :  { %1182 = vmatprep.subr.bf16.mxu1 %v1541_v0 }
 0x15b   :  { %1183 = vmatpush3.bf16.msra.mxu1 %v1637_v3 }
 0x15c   :  { %1184 = vmatprep.subr.bf16.mxu1 %v1541_v0 }
 0x15f   :  { %1185 = vmatpush3.bf16.msra.mxu1 %v1643_v4 }
 0x160   :  { %1186 = vmatprep.subr.bf16.mxu1 %v1541_v0 }
 0x163   :  { %1187 = vmatpush3.bf16.msra.mxu1 %v1649_v5 }
 0x164   :  { %1188 = vmatprep.subr.bf16.mxu1 %v1541_v0 }
 0x167   :  { %1189 = vmatpush3.bf16.msra.mxu1 %v1655_v6 }
 0x168   :  { %1190 = vmatprep.subr.bf16.mxu1 %v1541_v0 }
 0x16b   :  { %1191 = vmatpush3.bf16.msra.mxu1 %v1661_v7 }
 0x16c   :  { %1192 = vmatprep.subr.bf16.mxu1 %v1541_v0 }
 0x16f   :  { %1193 = vmatpush3.bf16.msra.mxu1 %v1667_v8 }
 0x170   :  { %1198 = vmatprep.subr.bf16.mxu1 %v1541_v0 }
 0x172   :  { %1195 = vmatmul.mubr.bf16.vlgmr.msra.gmra.mrb[4].mxu1 %v456_v29 }
 0x173   :  { %1199 = vmatpush3.bf16.msra.mxu1 %v1673_v10  ;;  %1214 = vmatprep.mubr.msk.bf16.mxu1 %vm1542_vm0, %v1541_v0 }
 0x174   :  { %1200 = vmatprep.subr.bf16.mxu1 %v1541_v0 }
 0x177   :  { %1201 = vmatpush3.bf16.msra.mxu1 %v1679_v12 }
 0x178   :  { %1202 = vmatprep.subr.bf16.mxu1 %v1541_v0 }
 0x17b   :  { %1203 = vmatpush3.bf16.msra.mxu1 %v1689_v13 }
 0x17c   :  { %1204 = vmatprep.subr.bf16.mxu1 %v1541_v0 }
 0x17f   :  { %1205 = vmatpush3.bf16.msra.mxu1 %v1695_v14 }
 0x180   :  { %1206 = vmatprep.subr.bf16.mxu1 %v1541_v0 }
 0x183   :  { %1207 = vmatpush3.bf16.msra.mxu1 %v1701_v15 }
 0x184   :  { %1208 = vmatprep.subr.bf16.mxu1 %v1541_v0 }
 0x187   :  { %1209 = vmatpush3.bf16.msra.mxu1 %v1707_v16 }
 0x188   :  { %1210 = vmatprep.subr.bf16.mxu1 %v1541_v0 }
 0x18b   :  { %1211 = vmatpush3.bf16.msra.mxu1 %v1713_v17 }
 0x18c   :  { %1212 = vmatprep.subr.bf16.mxu1 %v1541_v0 }
 0x18f   :  { %1213 = vmatpush3.bf16.msra.mxu1 %v1719_v18 }
 0x190   :  { %1258 = vmatprep.subr.bf16.mxu1 %v1541_v0 }
 0x225   :  { %v362_v30 = vpop.f32.mrb[0].mxu1 }
 0x226   :  { %v1379_v31 = vadd.f32 %v1767_v21, %v362_v30  ;;  %v1136_v32 = vpop.f32.mrb[1].mxu1 }
 0x227   :  { %v365_v33 = vpop.f32.mrb[2].mxu1 }
 0x228   :  { %v369_v34 = vmax.f32 %v1379_v31, 0.0  ;;  %v1137_v35 = vpop.f32.mrb[3].mxu1 }
 0x22a   :  { %v412_v36 = vpack.c.bf16 %v369_v34, %v369_v34 }
 0x22c   :  { %1175 = vmatmul.mubr.bf16.vlgmr.msra.gmra.mrb[4].mxu0 %v412_v36 }
 0x22d   :  { %1219 = vmatpush3.bf16.msra.mxu0 %v1628_v1  ;;  %1234 = vmatprep.mubr.msk.bf16.mxu0 %vm1542_vm0, %v1541_v0 }
 0x22e   :  { %1220 = vmatprep.subr.bf16.mxu0 %v1541_v0 }
 0x231   :  { %1221 = vmatpush3.bf16.msra.mxu0 %v1631_v2 }
 0x232   :  { %1222 = vmatprep.subr.bf16.mxu0 %v1541_v0 }
 0x235   :  { %1223 = vmatpush3.bf16.msra.mxu0 %v1637_v3 }
 0x236   :  { %1224 = vmatprep.subr.bf16.mxu0 %v1541_v0 }
 0x239   :  { %1225 = vmatpush3.bf16.msra.mxu0 %v1643_v4 }
 0x23a   :  { %1226 = vmatprep.subr.bf16.mxu0 %v1541_v0 }
 0x23d   :  { %1227 = vmatpush3.bf16.msra.mxu0 %v1649_v5 }
 0x23e   :  { %1228 = vmatprep.subr.bf16.mxu0 %v1541_v0 }
 0x241   :  { %1229 = vmatpush3.bf16.msra.mxu0 %v1655_v6 }
 0x242   :  { %1230 = vmatprep.subr.bf16.mxu0 %v1541_v0 }
 0x245   :  { %1231 = vmatpush3.bf16.msra.mxu0 %v1661_v7 }
 0x246   :  { %1232 = vmatprep.subr.bf16.mxu0 %v1541_v0 }
 0x249   :  { %1233 = vmatpush3.bf16.msra.mxu0 %v1667_v8 }
 0x24a   :  { %1238 = vmatprep.subr.bf16.mxu0 %v1541_v0 }
 0x24c   :  { %1235 = vmatmul.mubr.bf16.vlgmr.msra.gmra.mrb[8].mxu0 %v541_v37 }
 0x24d   :  { %1239 = vmatpush3.bf16.msra.mxu0 %v1673_v10  ;;  %1254 = vmatprep.mubr.msk.bf16.mxu0 %vm1542_vm0, %v1541_v0 }
 0x24e   :  { %1240 = vmatprep.subr.bf16.mxu0 %v1541_v0 }
 0x251   :  { %1241 = vmatpush3.bf16.msra.mxu0 %v1679_v12 }
 0x252   :  { %1242 = vmatprep.subr.bf16.mxu0 %v1541_v0 }
 0x255   :  { %1243 = vmatpush3.bf16.msra.mxu0 %v1689_v13 }
 0x256   :  { %1244 = vmatprep.subr.bf16.mxu0 %v1541_v0 }
 0x259   :  { %1245 = vmatpush3.bf16.msra.mxu0 %v1695_v14 }
 0x25a   :  { %1246 = vmatprep.subr.bf16.mxu0 %v1541_v0 }
 0x25d   :  { %1247 = vmatpush3.bf16.msra.mxu0 %v1701_v15 }
 0x25e   :  { %1248 = vmatprep.subr.bf16.mxu0 %v1541_v0 }
 0x261   :  { %1249 = vmatpush3.bf16.msra.mxu0 %v1707_v16 }
 0x262   :  { %1250 = vmatprep.subr.bf16.mxu0 %v1541_v0 }
 0x265   :  { %1251 = vmatpush3.bf16.msra.mxu0 %v1713_v17 }
 0x266   :  { %1252 = vmatprep.subr.bf16.mxu0 %v1541_v0 }
 0x269   :  { %1253 = vmatpush3.bf16.msra.mxu0 %v1719_v18 }
 0x26a   :  { %1298 = vmatprep.subr.bf16.mxu0 %v1541_v0 }
 0x2ff   :  { %v447_v38 = vpop.f32.mrb[4].mxu0 }
 0x300   :  { %v1380_v39 = vadd.f32 %v1767_v21, %v447_v38  ;;  %v1176_v40 = vpop.f32.mrb[5].mxu0 }
 0x301   :  { %v450_v41 = vpop.f32.mrb[6].mxu0 }
 0x302   :  { %v454_v42 = vmax.f32 %v1380_v39, 0.0  ;;  %v1177_v43 = vpop.f32.mrb[7].mxu0 }
 0x304   :  { %v497_v44 = vpack.c.bf16 %v454_v42, %v454_v42 }
 0x306   :  { %1215 = vmatmul.mubr.bf16.vlgmr.msra.gmra.mrb[4].mxu1 %v497_v44 }
 0x307   :  { %1259 = vmatpush3.bf16.msra.mxu1 %v1628_v1  ;;  %1274 = vmatprep.mubr.msk.bf16.mxu1 %vm1542_vm0, %v1541_v0 }
 0x308   :  { %1260 = vmatprep.subr.bf16.mxu1 %v1541_v0 }
 0x30b   :  { %1261 = vmatpush3.bf16.msra.mxu1 %v1631_v2 }
 0x30c   :  { %1262 = vmatprep.subr.bf16.mxu1 %v1541_v0 }
 0x30f   :  { %1263 = vmatpush3.bf16.msra.mxu1 %v1637_v3 }
 0x310   :  { %1264 = vmatprep.subr.bf16.mxu1 %v1541_v0 }
 0x313   :  { %1265 = vmatpush3.bf16.msra.mxu1 %v1643_v4 }
 0x314   :  { %1266 = vmatprep.subr.bf16.mxu1 %v1541_v0 }
 0x317   :  { %1267 = vmatpush3.bf16.msra.mxu1 %v1649_v5 }
 0x318   :  { %1268 = vmatprep.subr.bf16.mxu1 %v1541_v0 }
 0x31b   :  { %1269 = vmatpush3.bf16.msra.mxu1 %v1655_v6 }
 0x31c   :  { %1270 = vmatprep.subr.bf16.mxu1 %v1541_v0 }
 0x31f   :  { %1271 = vmatpush3.bf16.msra.mxu1 %v1661_v7 }
 0x320   :  { %1272 = vmatprep.subr.bf16.mxu1 %v1541_v0 }
 0x323   :  { %1273 = vmatpush3.bf16.msra.mxu1 %v1667_v8 }
 0x324   :  { %1278 = vmatprep.subr.bf16.mxu1 %v1541_v0 }
 0x326   :  { %1275 = vmatmul.mubr.bf16.vlgmr.msra.gmra.mrb[8].mxu1 %v626_v45 }
 0x327   :  { %1279 = vmatpush3.bf16.msra.mxu1 %v1673_v10  ;;  %1294 = vmatprep.mubr.msk.bf16.mxu1 %vm1542_vm0, %v1541_v0 }
 0x328   :  { %1280 = vmatprep.subr.bf16.mxu1 %v1541_v0 }
 0x32b   :  { %1281 = vmatpush3.bf16.msra.mxu1 %v1679_v12 }
 0x32c   :  { %1282 = vmatprep.subr.bf16.mxu1 %v1541_v0 }
 0x32f   :  { %1283 = vmatpush3.bf16.msra.mxu1 %v1689_v13 }
 0x330   :  { %1284 = vmatprep.subr.bf16.mxu1 %v1541_v0 }
 0x333   :  { %1285 = vmatpush3.bf16.msra.mxu1 %v1695_v14 }
 0x334   :  { %1286 = vmatprep.subr.bf16.mxu1 %v1541_v0 }
 0x337   :  { %1287 = vmatpush3.bf16.msra.mxu1 %v1701_v15 }
 0x338   :  { %1288 = vmatprep.subr.bf16.mxu1 %v1541_v0 }
 0x33b   :  { %1289 = vmatpush3.bf16.msra.mxu1 %v1707_v16 }
 0x33c   :  { %1290 = vmatprep.subr.bf16.mxu1 %v1541_v0 }
 0x33f   :  { %1291 = vmatpush3.bf16.msra.mxu1 %v1713_v17 }
 0x340   :  { %1292 = vmatprep.subr.bf16.mxu1 %v1541_v0 }
 0x343   :  { %1293 = vmatpush3.bf16.msra.mxu1 %v1719_v18 }
 0x344   :  { %1338 = vmatprep.subr.bf16.mxu1 %v1541_v0 }
 0x3d9   :  { %v532_v46 = vpop.f32.mrb[4].mxu1 }
 0x3da   :  { %v1381_v47 = vadd.f32 %v1767_v21, %v532_v46  ;;  %v1216_v48 = vpop.f32.mrb[5].mxu1 }
 0x3db   :  { %v535_v49 = vpop.f32.mrb[6].mxu1 }
 0x3dc   :  { %v539_v50 = vmax.f32 %v1381_v47, 0.0  ;;  %v1217_v51 = vpop.f32.mrb[7].mxu1 }
 0x3de   :  { %v582_v52 = vpack.c.bf16 %v539_v50, %v539_v50 }
 0x3e0   :  { %1255 = vmatmul.mubr.bf16.vlgmr.msra.gmra.mrb[8].mxu0 %v582_v52 }
 0x3e1   :  { %1299 = vmatpush3.bf16.msra.mxu0 %v1628_v1  ;;  %1314 = vmatprep.mubr.msk.bf16.mxu0 %vm1542_vm0, %v1541_v0 }
 0x3e2   :  { %1300 = vmatprep.subr.bf16.mxu0 %v1541_v0 }
 0x3e5   :  { %1301 = vmatpush3.bf16.msra.mxu0 %v1631_v2 }
 0x3e6   :  { %1302 = vmatprep.subr.bf16.mxu0 %v1541_v0 }
 0x3e9   :  { %1303 = vmatpush3.bf16.msra.mxu0 %v1637_v3 }
 0x3ea   :  { %1304 = vmatprep.subr.bf16.mxu0 %v1541_v0 }
 0x3ed   :  { %1305 = vmatpush3.bf16.msra.mxu0 %v1643_v4 }
 0x3ee   :  { %1306 = vmatprep.subr.bf16.mxu0 %v1541_v0 }
 0x3f1   :  { %1307 = vmatpush3.bf16.msra.mxu0 %v1649_v5 }
 0x3f2   :  { %1308 = vmatprep.subr.bf16.mxu0 %v1541_v0 }
 0x3f5   :  { %1309 = vmatpush3.bf16.msra.mxu0 %v1655_v6 }
 0x3f6   :  { %1310 = vmatprep.subr.bf16.mxu0 %v1541_v0 }
 0x3f9   :  { %1311 = vmatpush3.bf16.msra.mxu0 %v1661_v7 }
 0x3fa   :  { %1312 = vmatprep.subr.bf16.mxu0 %v1541_v0 }
 0x3fd   :  { %1313 = vmatpush3.bf16.msra.mxu0 %v1667_v8 }
 0x3fe   :  { %1318 = vmatprep.subr.bf16.mxu0 %v1541_v0 }
 0x400   :  { %1315 = vmatmul.mubr.bf16.vlgmr.msra.gmra.mrb[12].mxu0 %v711_v53 }
 0x401   :  { %1319 = vmatpush3.bf16.msra.mxu0 %v1673_v10  ;;  %1334 = vmatprep.mubr.msk.bf16.mxu0 %vm1542_vm0, %v1541_v0 }
 0x402   :  { %1320 = vmatprep.subr.bf16.mxu0 %v1541_v0 }
 0x405   :  { %1321 = vmatpush3.bf16.msra.mxu0 %v1679_v12 }
 0x406   :  { %1322 = vmatprep.subr.bf16.mxu0 %v1541_v0 }
 0x409   :  { %1323 = vmatpush3.bf16.msra.mxu0 %v1689_v13 }
 0x40a   :  { %1324 = vmatprep.subr.bf16.mxu0 %v1541_v0 }
 0x40d   :  { %1325 = vmatpush3.bf16.msra.mxu0 %v1695_v14 }
 0x40e   :  { %1326 = vmatprep.subr.bf16.mxu0 %v1541_v0 }
 0x411   :  { %1327 = vmatpush3.bf16.msra.mxu0 %v1701_v15 }
 0x412   :  { %1328 = vmatprep.subr.bf16.mxu0 %v1541_v0 }
 0x415   :  { %1329 = vmatpush3.bf16.msra.mxu0 %v1707_v16 }
 0x416   :  { %1330 = vmatprep.subr.bf16.mxu0 %v1541_v0 }
 0x419   :  { %1331 = vmatpush3.bf16.msra.mxu0 %v1713_v17 }
 0x41a   :  { %1332 = vmatprep.subr.bf16.mxu0 %v1541_v0 }
 0x41d   :  { %1333 = vmatpush3.bf16.msra.mxu0 %v1719_v18 }
 0x4b3   :  { %v617_v54 = vpop.f32.mrb[8].mxu0 }
 0x4b4   :  { %v1382_v55 = vadd.f32 %v1767_v21, %v617_v54  ;;  %v1256_v56 = vpop.f32.mrb[9].mxu0 }
 0x4b5   :  { %v620_v57 = vpop.f32.mrb[10].mxu0 }
 0x4b6   :  { %v624_v58 = vmax.f32 %v1382_v55, 0.0  ;;  %v1257_v59 = vpop.f32.mrb[11].mxu0 }
 0x4b8   :  { %v667_v60 = vpack.c.bf16 %v624_v58, %v624_v58 }
 0x4ba   :  { %1295 = vmatmul.mubr.bf16.vlgmr.msra.gmra.mrb[8].mxu1 %v667_v60 }
 0x4bb   :  { %1339 = vmatpush3.bf16.msra.mxu1 %v1628_v1  ;;  %1354 = vmatprep.mubr.msk.bf16.mxu1 %vm1542_vm0, %v1541_v0 }
 0x4bc   :  { %1340 = vmatprep.subr.bf16.mxu1 %v1541_v0 }
 0x4bf   :  { %1341 = vmatpush3.bf16.msra.mxu1 %v1631_v2 }
 0x4c0   :  { %1342 = vmatprep.subr.bf16.mxu1 %v1541_v0 }
 0x4c3   :  { %1343 = vmatpush3.bf16.msra.mxu1 %v1637_v3 }
 0x4c4   :  { %1344 = vmatprep.subr.bf16.mxu1 %v1541_v0 }
 0x4c7   :  { %1345 = vmatpush3.bf16.msra.mxu1 %v1643_v4 }
 0x4c8   :  { %1346 = vmatprep.subr.bf16.mxu1 %v1541_v0 }
 0x4cb   :  { %1347 = vmatpush3.bf16.msra.mxu1 %v1649_v5 }
 0x4cc   :  { %1348 = vmatprep.subr.bf16.mxu1 %v1541_v0 }
 0x4cf   :  { %1349 = vmatpush3.bf16.msra.mxu1 %v1655_v6 }
 0x4d0   :  { %1350 = vmatprep.subr.bf16.mxu1 %v1541_v0 }
 0x4d3   :  { %1351 = vmatpush3.bf16.msra.mxu1 %v1661_v7 }
 0x4d4   :  { %1352 = vmatprep.subr.bf16.mxu1 %v1541_v0 }
 0x4d7   :  { %1353 = vmatpush3.bf16.msra.mxu1 %v1667_v8 }
 0x4d8   :  { %1358 = vmatprep.subr.bf16.mxu1 %v1541_v0 }
 0x4da   :  { %1355 = vmatmul.mubr.bf16.vlgmr.msra.gmra.mrb[12].mxu1 %v796_v61 }
 0x4db   :  { %1359 = vmatpush3.bf16.msra.mxu1 %v1673_v10  ;;  %1374 = vmatprep.mubr.msk.bf16.mxu1 %vm1542_vm0, %v1541_v0 }
 0x4dc   :  { %1360 = vmatprep.subr.bf16.mxu1 %v1541_v0 }
 0x4df   :  { %1361 = vmatpush3.bf16.msra.mxu1 %v1679_v12 }
 0x4e0   :  { %1362 = vmatprep.subr.bf16.mxu1 %v1541_v0 }
 0x4e3   :  { %1363 = vmatpush3.bf16.msra.mxu1 %v1689_v13 }
 0x4e4   :  { %1364 = vmatprep.subr.bf16.mxu1 %v1541_v0 }
 0x4e7   :  { %1365 = vmatpush3.bf16.msra.mxu1 %v1695_v14 }
 0x4e8   :  { %1366 = vmatprep.subr.bf16.mxu1 %v1541_v0 }
 0x4eb   :  { %1367 = vmatpush3.bf16.msra.mxu1 %v1701_v15 }
 0x4ec   :  { %1368 = vmatprep.subr.bf16.mxu1 %v1541_v0 }
 0x4ef   :  { %1369 = vmatpush3.bf16.msra.mxu1 %v1707_v16 }
 0x4f0   :  { %1370 = vmatprep.subr.bf16.mxu1 %v1541_v0 }
 0x4f3   :  { %1371 = vmatpush3.bf16.msra.mxu1 %v1713_v17 }
 0x4f4   :  { %1372 = vmatprep.subr.bf16.mxu1 %v1541_v0 }
 0x4f7   :  { %1373 = vmatpush3.bf16.msra.mxu1 %v1719_v18 }
 0x58d   :  { %v702_v62 = vpop.f32.mrb[8].mxu1 }
 0x58e   :  { %v1383_v63 = vadd.f32 %v1767_v21, %v702_v62  ;;  %v1296_v1 = vpop.f32.mrb[9].mxu1 }
 0x58f   :  { %v705_v2 = vpop.f32.mrb[10].mxu1 }
 0x590   :  { %v709_v3 = vmax.f32 %v1383_v63, 0.0  ;;  %v1297_v4 = vpop.f32.mrb[11].mxu1 }
 0x592   :  { %v752_v5 = vpack.c.bf16 %v709_v3, %v709_v3 }
 0x594   :  { %1335 = vmatmul.mubr.bf16.vlgmr.msra.gmra.mrb[12].mxu0 %v752_v5 }
 0x667   :  { %v787_v6 = vpop.f32.mrb[12].mxu0 }
 0x668   :  { %v1384_v7 = vadd.f32 %v1767_v21, %v787_v6  ;;  %v1336_v8 = vpop.f32.mrb[13].mxu0 }
 0x669   :  { %v790_v9 = vpop.f32.mrb[14].mxu0 }
 0x66a   :  { %v794_v10 = vmax.f32 %v1384_v7, 0.0  ;;  %v1337_v11 = vpop.f32.mrb[15].mxu0 }
 0x66c   :  { %v837_v12 = vpack.c.bf16 %v794_v10, %v794_v10 }
 0x66e   :  { %1375 = vmatmul.mubr.bf16.vlgmr.msra.gmra.mrb[12].mxu1 %v837_v12 }
 0x741   :  { %v872_v0 = vpop.f32.mrb[12].mxu1 }
 0x742   :  { %v1385_v13 = vadd.f32 %v1767_v21, %v872_v0  ;;  %v1376_v14 = vpop.f32.mrb[13].mxu1 }
 0x743   :  { %v875_v15 = vpop.f32.mrb[14].mxu1 }
 0x744   :  { %v879_v16 = vmax.f32 %v1385_v13, 0.0  ;;  %v1377_v17 = vpop.f32.mrb[15].mxu1 }
 0x746   :  { %880 = vst [vmem:[#allocation8] sm:$0xff] %v879_v16 }
 0x747   :  { %1519 = shalt.err (!%p1516_p0)
}
 0x748   :  { %s1520_s30 = scalar_lea.hbm %s1971_s4, 128 }
 0x749   :  { %p1521_p1 = scmp.ne.s32.totalorder %s1971_s4, %s1520_s30  ;;  %p1524_p2 = scmp.lt.u32.totalorder %s1520_s30, %s1971_s4 }
 0x74b   :  { %p1526_p3 = pnand %p1524_p2, %p1521_p1 }
 0x74d   :  { %1529 = shalt.err (!%p1526_p3)
}
 0x74e   :  { %890 = dma.vmem_to_hbm [thread:$0]  %s888_s26, 128, %s1971_s4, [#allocation4]  }
 0x74f   :  { %1534 = dma.done.wait [#allocation4], 128  }
 0x750   :  { %1535 = vsyncadd [#allocation4], 4294967168 }
 0x751   :  { %894 = vsyncpa [#allocation3], 1 }
 0x752   :  { %895 = vsyncpa [#allocation6], 1 }
 0x753   :  { %896 = vsyncpa [#allocation4], 1 }

</bundles_post_ra>
